<compile_context>
chip_gen: v6e
topology: v6e:2x2x1
jax: 0.10.0
libtpu: 0.0.40
codegen_flags: <defaults>
</compile_context>

<pallas_src>
import math
import functools

import numpy as np
import jax
import jax.numpy as jnp
from jax import lax
from jax.experimental import pallas as pl
from jax.experimental.pallas import tpu as pltpu

# --- module constant (matches the PyTorch file) ---
d_k = 64
NEG_INF = -1e9


def _sdpa_kernel(q_ref, k_ref, v_ref, mask_ref, ctx_ref, w_ref, *, scale):
    bb, bh, bq, dk = q_ref.shape
    lk = k_ref.shape[2]
    dv = v_ref.shape[3]
    g = bb * bh

    # Fold 1/sqrt(d_k) into Q in f32, then feed bf16 operands to the MXU.
    # Leading-dim reshapes (bb, bh, ...) -> (bb*bh, ...) are layout-free.
    q = (q_ref[...].astype(jnp.float32) * scale).astype(jnp.bfloat16)
    q = q.reshape(g, bq, dk)
    k = k_ref[...].astype(jnp.bfloat16).reshape(g, lk, dk)
    v = v_ref[...].astype(jnp.bfloat16).reshape(g, lk, dv)

    # Batched Q @ K^T: contract dim 2 of both operands (no explicit transpose),
    # f32 accumulation on the MXU.
    scores = lax.dot_general(
        q, k,
        dimension_numbers=(((2,), (2,)), ((0,), (0,))),
        preferred_element_type=jnp.float32)                 # (g, bq, lk)

    # masked_fill_(attn_mask, -1e9); mask arrives as int8, nonzero => masked.
    mask = mask_ref[...].reshape(g, bq, lk) != 0
    scores = jnp.where(mask, NEG_INF, scores)

    # Numerically-stable softmax over the key axis.  Exact division for the
    # user-visible weights (rows sum to 1 at f32 precision).
    m = jnp.max(scores, axis=-1, keepdims=True)
    e = jnp.exp(scores - m)
    denom = jnp.sum(e, axis=-1, keepdims=True)
    w = e / denom

    w_ref[...] = w.reshape(bb, bh, bq, lk).astype(w_ref.dtype)

    # context = weights @ V (batched, bf16 operands, f32 accumulation).
    ctx = lax.dot_general(
        w.astype(jnp.bfloat16), v,
        dimension_numbers=(((2,), (1,)), ((0,), (0,))),
        preferred_element_type=jnp.float32)                 # (g, bq, dv)
    ctx_ref[...] = ctx.reshape(bb, bh, bq, dv).astype(ctx_ref.dtype)


@functools.partial(jax.jit, static_argnums=(4, 5, 6, 7, 8))
def _sdpa_pallas(Q, K, V, mask_i8, bb, bh, bq, w_dtype, vmem_limit):
    B, H, Lq, Dk = Q.shape
    Lk = K.shape[2]
    Dv = V.shape[3]
    grid = (B // bb, H // bh, Lq // bq)    # query axis innermost -> K/V reuse

    kernel = functools.partial(_sdpa_kernel, scale=1.0 / math.sqrt(d_k))

    in_specs = [
        pl.BlockSpec((bb, bh, bq, Dk), lambda b, h, q: (b, h, q, 0)),   # Q
        pl.BlockSpec((bb, bh, Lk, Dk), lambda b, h, q: (b, h, 0, 0)),   # K
        pl.BlockSpec((bb, bh, Lk, Dv), lambda b, h, q: (b, h, 0, 0)),   # V
        pl.BlockSpec((bb, bh, bq, Lk), lambda b, h, q: (b, h, q, 0)),   # mask
    ]
    out_specs = [
        pl.BlockSpec((bb, bh, bq, Dv), lambda b, h, q: (b, h, q, 0)),   # context
        pl.BlockSpec((bb, bh, bq, Lk), lambda b, h, q: (b, h, q, 0)),   # weights
    ]
    out_shape = [
        jax.ShapeDtypeStruct((B, H, Lq, Dv), Q.dtype),     # context
        jax.ShapeDtypeStruct((B, H, Lq, Lk), w_dtype),     # attention weights
    ]

    return pl.pallas_call(
        kernel,
        grid=grid,
        in_specs=in_specs,
        out_specs=out_specs,
        out_shape=out_shape,
        compiler_params=pltpu.CompilerParams(
            dimension_semantics=("parallel", "parallel", "parallel"),
            vmem_limit_bytes=vmem_limit,
        ),
    )(Q, K, V, mask_i8)


def _vmem_limit_bytes():
    """Scoped-VMEM limit derived from the physical capacity of this chip gen."""
    phys = None
    try:
        info = pltpu.get_tpu_info()
        phys = getattr(info, "vmem_capacity_bytes", None)
    except Exception:
        phys = None
    if not phys:
        phys = 64 * 1024 * 1024            # assume v7x (smallest VMEM) if unknown
    # ~75% of physical, capped at 100 MiB: 48 MiB on v7x, 96 MiB on v5e/v6e.
    return min(int(phys) * 3 // 4, 100 * 1024 * 1024)


def _divisors(n):
    return [d for d in range(1, n + 1) if n % d == 0]


def _choose_blocks(B, H, Lq, Lk, Dk, Dv, in_isz, w_isz, out_isz, budget):
    """Pick (block_b, block_h, block_q) from an explicit per-step byte budget,
    guaranteeing >=2 grid steps whenever the problem shape allows it."""

    def footprint(bb, bh, bq):
        g = bb * bh
        q_b = g * bq * Dk * in_isz
        k_b = g * Lk * Dk * in_isz
        v_b = g * Lk * Dv * in_isz
        m_b = g * bq * Lk * 1                       # int8 mask
        c_b = g * bq * Dv * out_isz
        w_b = g * bq * Lk * w_isz
        pipelined = 2 * (q_b + k_b + v_b + m_b + c_b + w_b)   # double-buffered
        # live in-kernel intermediates: f32 scores/exp/weights + bf16 operands
        scratch = 3 * g * bq * Lk * 4 + 2 * (g * bq * Dk + g * Lk * Dk + g * Lk * Dv)
        return pipelined + scratch

    bq_opts = [d for d in _divisors(Lq) if d % 8 == 0 or d == Lq]
    best, best_key = None, None
    for bb in _divisors(B):
        for bh in _divisors(H):
            for bq in bq_opts:
                if footprint(bb, bh, bq) > budget:
                    continue
                steps = (B // bb) * (H // bh) * (Lq // bq)
                rows = bb * bh * bq                 # batched matmul query rows/step
                # priority: >=2 steps (pipelining + v7x 2 TCs), then enough rows
                # to keep the MXU cadence full, then a few extra steps.
                key = (min(steps, 2), min(rows, 512), min(steps, 8))
                if best_key is None or key > best_key:
                    best, best_key = (bb, bh, bq), key
    if best is None:                                # nothing fits: smallest block
        best = (1, 1, min(bq_opts))
    return best


def scaled_dot_product_attention(Q, K, V, attn_mask, *, weights_dtype=jnp.float32):
    """Pallas equivalent of ScaleDotProductAttention.forward.

    Q: (B, H, Lq, d_k), K: (B, H, Lk, d_k), V: (B, H, Lk, d_v)
    attn_mask: (B, H, Lq, Lk), truthy where the key position must be masked.
    Returns (context (B,H,Lq,d_v), weights (B,H,Lq,Lk)).
    """
    B, H, Lq, Dk = Q.shape
    Lk = K.shape[2]
    Dv = V.shape[3]

    vmem_limit = _vmem_limit_bytes()
    bb, bh, bq = _choose_blocks(
        B, H, Lq, Lk, Dk, Dv,
        np.dtype(Q.dtype).itemsize,
        np.dtype(weights_dtype).itemsize,
        np.dtype(Q.dtype).itemsize,
        budget=vmem_limit)

    mask_i8 = attn_mask.astype(jnp.int8)     # 4x fewer HBM bytes than f32 mask
    return _sdpa_pallas(Q, K, V, mask_i8, bb, bh, bq, weights_dtype, vmem_limit)


if __name__ == "__main__":
    key = jax.random.PRNGKey(0)
    B, H, Lq, Lk = 2, 8, 8, 8
    Dk, Dv = d_k, 64

    kq, kk, kv = jax.random.split(key, 3)
    Q = jax.random.normal(kq, (B, H, Lq, Dk), jnp.float32)
    K = jax.random.normal(kk, (B, H, Lk, Dk), jnp.float32)
    V = jax.random.normal(kv, (B, H, Lk, Dv), jnp.float32)

    # Pad-style mask: batch element 1 has its last two key positions padded.
    key_is_pad = jnp.zeros((B, Lk), dtype=bool).at[1, 6:].set(True)
    attn_mask = jnp.broadcast_to(key_is_pad[:, None, None, :], (B, H, Lq, Lk))

    context, weights = scaled_dot_product_attention(Q, K, V, attn_mask)
    context = jax.block_until_ready(context)
    weights = jax.block_until_ready(weights)

    # Pure-JAX reference (same math as the PyTorch forward).
    scores_ref = jnp.einsum("bhqd,bhkd->bhqk", Q, K) / math.sqrt(d_k)
    scores_ref = jnp.where(attn_mask, NEG_INF, scores_ref)
    weights_ref = jax.nn.softmax(scores_ref, axis=-1)
    context_ref = jnp.einsum("bhqk,bhkd->bhqd", weights_ref, V)

    assert context.shape == (B, H, Lq, Dv)
    assert weights.shape == (B, H, Lq, Lk)
    assert bool(jnp.all(jnp.isfinite(context)))
    # exact-division softmax: rows sum to 1 at f32 precision
    assert bool(jnp.allclose(jnp.sum(weights, axis=-1), 1.0, atol=1e-3))
    # matches the reference within bf16-MXU-operand tolerance
    assert bool(jnp.allclose(weights, weights_ref, atol=3e-2))
    assert bool(jnp.allclose(context, context_ref, atol=1e-1, rtol=5e-2))
    # masked key positions receive ~zero attention
    assert bool(jnp.all(weights[1, :, :, 6:] < 1e-6))
    print("KERNEL_OK")
</pallas_src>

<mosaic_0001>
module attributes {stable_mosaic.version = 11 : i64} {
  func.func @_sdpa_kernel(%arg0: i32, %arg1: i32, %arg2: i32, %arg3: memref<1x8x8x64xf32, #tpu.memory_space<vmem>>, %arg4: memref<1x8x8x64xf32, #tpu.memory_space<vmem>>, %arg5: memref<1x8x8x64xf32, #tpu.memory_space<vmem>>, %arg6: memref<1x8x8x8xi8, #tpu.memory_space<vmem>>, %arg7: memref<1x8x8x64xf32, #tpu.memory_space<vmem>>, %arg8: memref<1x8x8x8xf32, #tpu.memory_space<vmem>>) attributes {dimension_semantics = [#tpu.dimension_semantics<parallel>, #tpu.dimension_semantics<parallel>, #tpu.dimension_semantics<parallel>], iteration_bounds = array<i64: 2, 1, 1>, scalar_prefetch = 0 : i64, scratch_operands = 0 : i64, tpu.core_type = #tpu.core_type<tc>, window_params = [{transform_indices = @transform_0, window_bounds = array<i64: 1, 8, 8, 64>}, {transform_indices = @transform_1, window_bounds = array<i64: 1, 8, 8, 64>}, {transform_indices = @transform_2, window_bounds = array<i64: 1, 8, 8, 64>}, {transform_indices = @transform_3, window_bounds = array<i64: 1, 8, 8, 8>}, {transform_indices = @transform_4, window_bounds = array<i64: 1, 8, 8, 64>}, {transform_indices = @transform_5, window_bounds = array<i64: 1, 8, 8, 8>}]} {
    %c0 = arith.constant 0 : index
    %c0_0 = arith.constant 0 : index
    %c0_1 = arith.constant 0 : index
    %c0_2 = arith.constant 0 : index
    %0 = vector.load %arg3[%c0, %c0_0, %c0_1, %c0_2] : memref<1x8x8x64xf32, #tpu.memory_space<vmem>>, vector<1x8x8x64xf32>
    %cst = arith.constant 1.250000e-01 : f32
    %1 = vector.broadcast %cst : f32 to vector<1x8x8x64xf32>
    %2 = arith.mulf %0, %1 : vector<1x8x8x64xf32>
    %3 = arith.truncf %2 : vector<1x8x8x64xf32> to vector<1x8x8x64xbf16>
    %4 = vector.shape_cast %3 : vector<1x8x8x64xbf16> to vector<8x8x64xbf16>
    %c0_3 = arith.constant 0 : index
    %c0_4 = arith.constant 0 : index
    %c0_5 = arith.constant 0 : index
    %c0_6 = arith.constant 0 : index
    %5 = vector.load %arg4[%c0_3, %c0_4, %c0_5, %c0_6] : memref<1x8x8x64xf32, #tpu.memory_space<vmem>>, vector<1x8x8x64xf32>
    %6 = arith.truncf %5 : vector<1x8x8x64xf32> to vector<1x8x8x64xbf16>
    %7 = vector.shape_cast %6 : vector<1x8x8x64xbf16> to vector<8x8x64xbf16>
    %c0_7 = arith.constant 0 : index
    %c0_8 = arith.constant 0 : index
    %c0_9 = arith.constant 0 : index
    %c0_10 = arith.constant 0 : index
    %8 = vector.load %arg5[%c0_7, %c0_8, %c0_9, %c0_10] : memref<1x8x8x64xf32, #tpu.memory_space<vmem>>, vector<1x8x8x64xf32>
    %9 = arith.truncf %8 : vector<1x8x8x64xf32> to vector<1x8x8x64xbf16>
    %10 = vector.shape_cast %9 : vector<1x8x8x64xbf16> to vector<8x8x64xbf16>
    %cst_11 = arith.constant dense<0.000000e+00> : vector<8x8x8xf32>
    %11 = tpu.matmul %4, %7, %cst_11 {dimension_numbers = #tpu.dot_dimension_numbers<[2], [2], [1], [1], [0, 0, 0, 1, 1, 1], [0], [0]>} : vector<8x8x64xbf16>, vector<8x8x64xbf16>, vector<8x8x8xf32> -> vector<8x8x8xf32>
    %c0_12 = arith.constant 0 : index
    %c0_13 = arith.constant 0 : index
    %c0_14 = arith.constant 0 : index
    %c0_15 = arith.constant 0 : index
    %12 = vector.load %arg6[%c0_12, %c0_13, %c0_14, %c0_15] : memref<1x8x8x8xi8, #tpu.memory_space<vmem>>, vector<1x8x8x8xi8>
    %13 = vector.shape_cast %12 : vector<1x8x8x8xi8> to vector<8x8x8xi8>
    %c0_i8 = arith.constant 0 : i8
    %14 = vector.broadcast %c0_i8 : i8 to vector<8x8x8xi8>
    %15 = arith.cmpi ne, %13, %14 : vector<8x8x8xi8>
    %cst_16 = arith.constant -1.000000e+09 : f32
    %16 = vector.broadcast %cst_16 : f32 to vector<8x8x8xf32>
    %17 = arith.select %15, %16, %11 : vector<8x8x8xi1>, vector<8x8x8xf32>
    %cst_17 = arith.constant dense<0xFF800000> : vector<8x8xf32>
    %18 = vector.multi_reduction <maximumf>, %17, %cst_17 [2] : vector<8x8x8xf32> to vector<8x8xf32>
    %19 = vector.shape_cast %18 : vector<8x8xf32> to vector<8x8x1xf32>
    %20 = vector.broadcast %19 : vector<8x8x1xf32> to vector<8x8x8xf32>
    %21 = arith.subf %17, %20 : vector<8x8x8xf32>
    %22 = math.exp %21 : vector<8x8x8xf32>
    %cst_18 = arith.constant dense<0.000000e+00> : vector<8x8xf32>
    %23 = vector.multi_reduction <add>, %22, %cst_18 [2] : vector<8x8x8xf32> to vector<8x8xf32>
    %24 = vector.shape_cast %23 : vector<8x8xf32> to vector<8x8x1xf32>
    %25 = vector.broadcast %24 : vector<8x8x1xf32> to vector<8x8x8xf32>
    %26 = arith.divf %22, %25 : vector<8x8x8xf32>
    %27 = vector.shape_cast %26 : vector<8x8x8xf32> to vector<1x8x8x8xf32>
    %c0_19 = arith.constant 0 : index
    %c0_20 = arith.constant 0 : index
    %c0_21 = arith.constant 0 : index
    %c0_22 = arith.constant 0 : index
    %28 = vector.load %arg8[%c0_19, %c0_20, %c0_21, %c0_22] : memref<1x8x8x8xf32, #tpu.memory_space<vmem>>, vector<1x8x8x8xf32>
    tpu.vector_store %arg8[%c0_19, %c0_20, %c0_21, %c0_22], %27 {strides = array<i32>} : memref<1x8x8x8xf32, #tpu.memory_space<vmem>>, vector<1x8x8x8xf32>,
    %29 = arith.truncf %26 : vector<8x8x8xf32> to vector<8x8x8xbf16>
    %cst_23 = arith.constant dense<0.000000e+00> : vector<8x8x64xf32>
    %30 = tpu.matmul %29, %10, %cst_23 {dimension_numbers = #tpu.dot_dimension_numbers<[2], [1], [1], [2], [0, 0, 0, 1, 1, 2], [0], [0]>} : vector<8x8x8xbf16>, vector<8x8x64xbf16>, vector<8x8x64xf32> -> vector<8x8x64xf32>
    %31 = vector.shape_cast %30 : vector<8x8x64xf32> to vector<1x8x8x64xf32>
    %c0_24 = arith.constant 0 : index
    %c0_25 = arith.constant 0 : index
    %c0_26 = arith.constant 0 : index
    %c0_27 = arith.constant 0 : index
    %32 = vector.load %arg7[%c0_24, %c0_25, %c0_26, %c0_27] : memref<1x8x8x64xf32, #tpu.memory_space<vmem>>, vector<1x8x8x64xf32>
    tpu.vector_store %arg7[%c0_24, %c0_25, %c0_26, %c0_27], %31 {strides = array<i32>} : memref<1x8x8x64xf32, #tpu.memory_space<vmem>>, vector<1x8x8x64xf32>,
    return
  }
  func.func @transform_0(%arg0: i32, %arg1: i32, %arg2: i32) -> (i32, i32, i32, i32) {
    %c0_i32 = arith.constant 0 : i32
    %c0_i32_0 = arith.constant 0 : i32
    return %arg0, %arg1, %arg2, %c0_i32 : i32, i32, i32, i32
  }
  func.func @transform_1(%arg0: i32, %arg1: i32, %arg2: i32) -> (i32, i32, i32, i32) {
    %c0_i32 = arith.constant 0 : i32
    %c0_i32_0 = arith.constant 0 : i32
    %c0_i32_1 = arith.constant 0 : i32
    return %arg0, %arg1, %c0_i32, %c0_i32_0 : i32, i32, i32, i32
  }
  func.func @transform_2(%arg0: i32, %arg1: i32, %arg2: i32) -> (i32, i32, i32, i32) {
    %c0_i32 = arith.constant 0 : i32
    %c0_i32_0 = arith.constant 0 : i32
    %c0_i32_1 = arith.constant 0 : i32
    return %arg0, %arg1, %c0_i32, %c0_i32_0 : i32, i32, i32, i32
  }
  func.func @transform_3(%arg0: i32, %arg1: i32, %arg2: i32) -> (i32, i32, i32, i32) {
    %c0_i32 = arith.constant 0 : i32
    %c0_i32_0 = arith.constant 0 : i32
    return %arg0, %arg1, %arg2, %c0_i32 : i32, i32, i32, i32
  }
  func.func @transform_4(%arg0: i32, %arg1: i32, %arg2: i32) -> (i32, i32, i32, i32) {
    %c0_i32 = arith.constant 0 : i32
    %c0_i32_0 = arith.constant 0 : i32
    return %arg0, %arg1, %arg2, %c0_i32 : i32, i32, i32, i32
  }
  func.func @transform_5(%arg0: i32, %arg1: i32, %arg2: i32) -> (i32, i32, i32, i32) {
    %c0_i32 = arith.constant 0 : i32
    %c0_i32_0 = arith.constant 0 : i32
    return %arg0, %arg1, %arg2, %c0_i32 : i32, i32, i32, i32
  }
}

</mosaic_0001>

<bundles_post_ra>
// kernel: _sdpa_pallas.1
= control target key start
LH: loop header
LB: loop body
LE: loop exit
PB: predicated region body
PF: predicated region fallthrough
CT: control target
= control target key end

     0   :  { %s2705_s0 = inlined_call_operand.hbm [shape: f32[2,8,8,64], index: 0, kind: input, shape index: {}]   ;;  %s2706_s1 = inlined_call_operand.hbm [shape: f32[2,8,8,64], index: 1, kind: input, shape index: {}]   ;;  %s2707_s2 = inlined_call_operand.hbm [shape: f32[2,8,8,64], index: 2, kind: input, shape index: {}]   ;;  %s2708_s3 = inlined_call_operand.hbm [shape: s8[2,8,8,8], index: 3, kind: input, shape index: {}]   ;;  %s2709_s4 = inlined_call_operand.hbm [shape: f32[2,8,8,64], index: 4, kind: output, shape index: {0}]   ;;  %s2710_s5 = inlined_call_operand.hbm [shape: f32[2,8,8,8], index: 5, kind: output, shape index: {1}]  }
   0x1   :  { %2718 = sst [smem:[#allocation23_spill]] %s2706_s1 }
   0x2   :  { %2719 = sst [smem:[#allocation24_spill]] %s2709_s4 }
   0x3   :  { %11 = vsyncpa [#allocation3], 0 }
   0x4   :  { %13 = vsyncpa [#allocation3 + $0x1], 0 }
   0x5   :  { %14 = vsyncpa [#allocation6], 0 }
   0x6   :  { %16 = vsyncpa [#allocation6 + $0x1], 0 }
   0x7   :  { %17 = vsyncpa [#allocation9], 0 }
   0x8   :  { %19 = vsyncpa [#allocation9 + $0x1], 0 }
   0x9   :  { %20 = vsyncpa [#allocation4], 0 }
   0xa   :  { %22 = vsyncpa [#allocation4 + $0x1], 0 }
   0xb   :  { %23 = vsyncpa [#allocation12], 0 }
   0xc   :  { %25 = vsyncpa [#allocation12 + $0x1], 0  ;;  %s2210_s18 = smov 0   ;;  %s2212_s19 = smov 0  }
   0xd   :  { %s2214_s20 = smov 0   ;;  %s2216_s21 = smov 0  }
   0xe   :  { %s2218_s22 = smov 0   ;;  %s2220_s23 = smov 0  }
   0xf LB: > { %2720 = sst [smem:[#allocation18_spill]] %s2143_s18  ;;  %s2241_s24 = sadd.s32 4294967295, %s2163_s23   ;;  %s2163_s23 = sphi %s2220_s23, %s31_s23   ;;  %s2159_s22 = sphi %s2218_s22, %s2743_s22   ;;  %s2155_s21 = sphi %s2216_s21, %s2742_s21   ;;  %s2151_s20 = sphi %s2214_s20, %s2738_s20   ;;  %s2147_s19 = sphi %s2212_s19, %s2741_s19   ;;  %s2143_s18 = sphi %s2210_s18, %s2740_s18  }
  0x10   : > { %2721 = sst [smem:[#allocation19_spill]] %s2151_s20  ;;  %s1630_s25 = sadd.s32 4294967294, %s2163_s23  }
  0x11   : > { %s50_s26 = sadd.s32 1, %s2159_s22  ;;  %s61_s27 = sadd.s32 1, %s2151_s20 }
  0x12   : > { %p52_p0 = scmp.ge.s32.totalorder %s50_s26, 2  ;;  %p68_p1 = scmp.ne.s32.totalorder %s2151_s20, %s2147_s19 }
  0x13   : > { %p69_p2 = scmp.eq.s32.totalorder %s2163_s23, 0  ;;  %p74_p3 = scmp.ne.s32.totalorder %s2147_s19, %s2143_s18 }
  0x14   : > { %s2745_s26 = smov (%p52_p0, %s50_s26), 0  ;;  %p75_p5 = scmp.eq.s32.totalorder %s2241_s24, 0 }
  0x15   : > { %2722 = sst [smem:[#allocation20_spill]] %s2745_s26  ;;  %p2253_p4 = por %p69_p2, %p68_p1 }
  0x16   : > { %s54_s29 = ssub.s32 %s2159_s22, %s2745_s26  ;;  %p188_p6 = scmp.eq.s32.totalorder %s2241_s24, 1 }
  0x17   : > { %p59_p7 = scmp.eq.s32.totalorder %s54_s29, 0  ;;  %p2261_p8 = por %p75_p5, %p74_p3 }
  0x18   : > { %p2265_p9 = por %p188_p6, %p68_p1  ;;  %p194_p10 = scmp.eq.s32.totalorder %s1630_s25, 1 }
  0x19   : > { %s2270_s7 = scalar_select %p59_p7, %s2151_s20, %s61_s27  }
  0x1a   : > { %p2272_p11 = por %p194_p10, %p74_p3  ;;  %p1842_p13 = scmp.lt.s32.totalorder %s2163_s23, 2 }
  0x1b   : > { %2726 = sst [smem:[#allocation21_spill]] %s2270_s7  ;;  %s2279_s9 = sand.u32 1, %s2151_s20  }
  0x1c   : > { %s2727_s8 = scalar_select %p2272_p11, 1, 0 }
  0x1d   : > { %s2282_s10 = sshll.u32 %s2279_s9, 6  ;;  %s2285_s11 = sshll.u32 %s2159_s22, 10 }
  0x1e   : > { %2728 = sst [smem:[#allocation22_spill]] %s2727_s8  ;;  %p2289_p0 = pnand %p1842_p13, %p2253_p4 }
  0x1f   : > { %s268_s13 = sand.u32 1, %s2163_s23   ;;  %s2730_s1 = sld [smem:[#allocation23_spill]] }
  0x20   : > { %s272_s17 = scalar_lea.vmem [#allocation5], %s2282_s10  ;;  %p1645_p1 = scmp.ge.s32.totalorder %s2163_s23, 1 }
  0x21   : > { %s281_s25 = sshll.u32 %s272_s17, 4  ;;  %p336_p2 = scmp.lt.s32.totalorder %s2163_s23, 3  ;;  %s282_s25 = int_to_ptr.vmem [resolvable:$true] %s281_s25 }
  0x22   : > { %s2301_s27 = scalar_lea.sflag [#allocation6], %s268_s13  ;;  %p1935_p3 = pneg %p2289_p0 }
  0x23   : > { %s1946_s28 = scalar_lea.vmem %s282_s25, 1024  ;;  %s2165_s29 = smov [#allocation5]  }
  0x24   : > { %p1947_p4 = scmp.ne.s32.totalorder %s282_s25, %s1946_s28  ;;  %s1951_s26 = sshll.u32 %s2165_s29, 4  ;;  %s1952_s26 = int_to_ptr.vmem [resolvable:$false] %s1951_s26 }
  0x25   : > { %s280_s16 = scalar_lea.hbm %s2730_s1, %s2285_s11  ;;  %s1953_s14 = scalar_lea.vmem %s1952_s26, 2048 }
  0x26   : > { %p1949_p5 = pnand %p1947_p4, %p1935_p3  ;;  %p1954_p7 = scmp.lt.s32.totalorder %s282_s25, %s1952_s26 }
  0x27   : > { %p1955_p10 = scmp.lt.s32.totalorder %s1953_s14, %s1946_s28 }
  0x28   : > { %p1950_p6 = pneg %p1949_p5 }
  0x29   : > { %p1956_p13 = por %p1955_p10, %p1954_p7 }
  0x2b   : > { %p1957_p12 = pnand %p1956_p13, %p1950_p6 }
  0x2d   : > { %1960 = shalt.err (!%p1957_p12)
}
  0x2e   : > { %s2716_s15 = smov 128   ;;  %s2167_s13 = smov 8  }
  0x2f   : > { %1828 = dma.hbm_to_vmem [thread:$0]  (!%p2289_p0), %s280_s16, 1024, %s282_s25, %s2301_s27, %s2716_s15, %s2716_s15, %s2167_s13  }
  0x30   : > { %p2318_p4 = pnand %p1645_p1, %p336_p2  ;;  %s257_s29 = scalar_lea.hbm %s2705_s0, %s2285_s11 }
  0x31   : > { %s248_s14 = scalar_lea.vmem [#allocation2], %s2282_s10  ;;  %s303_s8 = scalar_lea.hbm %s2707_s2, %s2285_s11 }
  0x32   : > { %s258_s1 = sshll.u32 %s248_s14, 4  ;;  %s245_s18 = scalar_lea.sflag [#allocation3], %s2279_s9  ;;  %s259_s1 = int_to_ptr.vmem [resolvable:$true] %s258_s1 }
  0x33   : > { %s1974_s4 = scalar_lea.vmem %s259_s1, 1024  ;;  %s2168_s16 = smov [#allocation2]  }
  0x34   : > { %p1975_p12 = scmp.ne.s32.totalorder %s259_s1, %s1974_s4  ;;  %s1979_s25 = sshll.u32 %s2168_s16, 4  ;;  %s1980_s25 = int_to_ptr.vmem [resolvable:$false] %s1979_s25 }
  0x35   : > { %s1981_s15 = scalar_lea.vmem %s1980_s25, 2048  ;;  %p1982_p5 = scmp.lt.s32.totalorder %s259_s1, %s1980_s25 }
  0x36   : > { %p1977_p1 = pnand %p1975_p12, %p1935_p3  ;;  %p1983_p6 = scmp.lt.s32.totalorder %s1981_s15, %s1974_s4 }
  0x38   : > { %p1978_p2 = pneg %p1977_p1  ;;  %p1984_p7 = por %p1983_p6, %p1982_p5 }
  0x3a   : > { %p1985_p10 = pnand %p1984_p7, %p1978_p2 }
  0x3c   : > { %1988 = shalt.err (!%p1985_p10)
}
  0x3d   : > { %s2732_s20 = smov 128   ;;  %s295_s7 = scalar_lea.vmem [#allocation7], %s2282_s10 }
  0x3e   : > { %1825 = dma.hbm_to_vmem [thread:$0]  (!%p2289_p0), %s257_s29, 1024, %s259_s1, %s245_s18, %s2732_s20, %s2732_s20, %s2167_s13  }
  0x3f   : > { %s304_s17 = sshll.u32 %s295_s7, 4  ;;  %s1642_s28 = sshll.u32 %s2279_s9, 4  ;;  %s305_s17 = int_to_ptr.vmem [resolvable:$true] %s304_s17 }
  0x40   : > { %s2002_s14 = scalar_lea.vmem %s305_s17, 1024  ;;  %s2169_s4 = smov [#allocation7]  }
  0x41   : > { %p2003_p13 = scmp.ne.s32.totalorder %s305_s17, %s2002_s14  ;;  %s2007_s15 = sshll.u32 %s2169_s4, 4  ;;  %s2008_s15 = int_to_ptr.vmem [resolvable:$false] %s2007_s15 }
  0x42   : > { %s2009_s16 = scalar_lea.vmem %s2008_s15, 2048  ;;  %p2010_p2 = scmp.lt.s32.totalorder %s305_s17, %s2008_s15 }
  0x43   : > { %p2005_p12 = pnand %p2003_p13, %p1935_p3  ;;  %p2011_p5 = scmp.lt.s32.totalorder %s2009_s16, %s2002_s14 }
  0x45   : > { %p2006_p1 = pneg %p2005_p12  ;;  %p2012_p6 = por %p2011_p5, %p2010_p2 }
  0x47   : > { %p2013_p7 = pnand %p2012_p6, %p2006_p1 }
  0x49   : > { %2016 = shalt.err (!%p2013_p7)
}
  0x4a   : > { %1831 = dma.hbm_to_vmem [thread:$0]  (!%p2289_p0), %s303_s8, 1024, %s305_s17, %s2301_s27, %s2732_s20, %s2732_s20, %s2167_s13  }
  0x4b   : > { %s1679_s10 = sshll.u32 %s2159_s22, 8  ;;  %s318_s14 = scalar_lea.vmem [#allocation8], %s1642_s28 }
  0x4c   : > { %s327_s7 = scalar_lea.hbm %s2708_s3, %s1679_s10  ;;  %s328_s4 = sshll.u32 %s318_s14, 4  ;;  %s329_s4 = int_to_ptr.vmem [resolvable:$true] %s328_s4 }
  0x4d   : > { %s315_s15 = scalar_lea.sflag [#allocation9], %s2279_s9  ;;  %s2030_s16 = scalar_lea.vmem %s329_s4, 256 }
  0x4e   : > { %p2031_p10 = scmp.ne.s32.totalorder %s329_s4, %s2030_s16  ;;  %s2170_s11 = smov [#allocation8]  }
  0x4f   : > { %s2035_s1 = sshll.u32 %s2170_s11, 4  ;;  %s2036_s1 = int_to_ptr.vmem [resolvable:$false] %s2035_s1 }
  0x50   : > { %p2033_p13 = pnand %p2031_p10, %p1935_p3  ;;  %s2037_s18 = scalar_lea.vmem %s2036_s1, 512 }
  0x51   : > { %p2038_p1 = scmp.lt.s32.totalorder %s329_s4, %s2036_s1  ;;  %p2039_p2 = scmp.lt.s32.totalorder %s2037_s18, %s2030_s16 }
  0x52   : > { %p2034_p12 = pneg %p2033_p13 }
  0x53   : > { %p2040_p5 = por %p2039_p2, %p2038_p1 }
  0x55   : > { %p2041_p6 = pnand %p2040_p5, %p2034_p12 }
  0x57   : > { %2044 = shalt.err (!%p2041_p6)
}
  0x58   : > { %s2171_s8 = smov 32   ;;  %s2172_s27 = smov 2  }
  0x59   : > { %1834 = dma.hbm_to_vmem [thread:$0]  (!%p2289_p0), %s327_s7, 256, %s329_s4, %s315_s15, %s2171_s8, %s2171_s8, %s2172_s27  }
  0x5a   : > { %340 = sbr.rel (%p2318_p4) target bundleno = 858 (0x35a), region = 36  ;;  %s2369_s9 = sand.u32 (!%p2318_p4), 1, %s2147_s19  }
  0x5b   : > { %s2372_s13 = sshll.u32 (!%p2318_p4), %s2369_s9, 6  ;;  %s343_s20 = scalar_lea.sflag (!%p2318_p4), [#allocation3], %s2369_s9 }
  0x5c   : > { %s2376_s17 = scalar_lea.vmem (!%p2318_p4), [#allocation2], %s2372_s13 }
  0x5f   : > { %2122 = dma.done.wait (%p2261_p8), %s343_s20, 1024  }
  0x60   : > { %2124 = vsyncadd (%p2261_p8), %s343_s20, 4294966272  ;;  %s351_s12 = sand.u32 1, %s2241_s24   ;;  %s2384_s28 = scalar_lea.vmem [#allocation5], %s2372_s13 }
  0x61   : > { %s352_s26 = scalar_lea.sflag [#allocation6], %s351_s12 }
  0x62   : > { %2126 = dma.done.wait (%p2261_p8), %s352_s26, 2048  }
  0x63   : > { %2128 = vsyncadd (%p2261_p8), %s352_s26, 4294965248  ;;  %s1649_s10 = sshll.u32 %s2369_s9, 4  ;;  %s2392_s29 = scalar_lea.vmem [#allocation7], %s2372_s13 }
  0x64   : > { %s370_s25 = scalar_lea.sflag [#allocation9], %s2369_s9  ;;  %s2395_s7 = scalar_lea.vmem [#allocation8], %s1649_s10 }
  0x65   : > { %2130 = dma.done.wait (%p2261_p8), %s370_s25, 256  }
  0x66   : > { %2132 = vsyncadd (%p2261_p8), %s370_s25, 4294967040  ;;  %v2173_v0 = vmov 0.0   ;;  %vm2174_vm0 = vmmov 0   ;;  %v453_v1 = vld [vmem:[%s2384_s28] sm:$0xff]  ;;  %vm485_vm1 = vcmask 523264   ;;  %v454_v2 = vld [vmem:[%s2384_s28 + $0x8] sm:$0xff] }
  0x67   : > { %1714 = vmatprep.subr.bf16.mxu0 %v2173_v0  ;;  %1720 = vmatprep.subr.bf16.mxu1 %v2173_v0  ;;  %v429_v3 = vld [vmem:[%s2376_s17] sm:$0xff]  ;;  %v461_v4 = vpack.c.bf16 %v453_v1, %v453_v1  ;;  %v462_v5 = vpack.c.bf16 %v454_v2, %v454_v2  ;;  %v430_v6 = vld [vmem:[%s2376_s17 + $0x8] sm:$0xff]  ;;  %v455_v7 = vld [vmem:[%s2384_s28 + $0x10] sm:$0xff]  ;;  %v2175_v51 = vmov 0   ;;  %vm902_vm8 = vcmask 64512   ;;  %s2533_s24 = scalar_lea.vmem [#allocation11], %s2372_s13 }
  0x68   : > { %1716 = vmatprep.mubr.msk.bf16.mxu0 %vm2174_vm0, %v2173_v0  ;;  %1722 = vmatprep.mubr.msk.bf16.mxu1 %vm2174_vm0, %v2173_v0  ;;  %v456_v8 = vld [vmem:[%s2384_s28 + $0x18] sm:$0xff]  ;;  %v437_v11 = vmul.f32 0.125, %v429_v3  ;;  %v438_v12 = vmul.f32 0.125, %v430_v6  ;;  %v463_v13 = vpack.c.bf16 %v455_v7, %v455_v7  ;;  %v431_v17 = vld [vmem:[%s2376_s17 + $0x10] sm:$0xff]  ;;  %v457_v21 = vld [vmem:[%s2384_s28 + $0x20] sm:$0xff]  ;;  %s1680_s30 = sshll.u32 %s2155_s21, 10 }
  0x69   : > { %v490_v9 = vsel %vm485_vm1, %v461_v4, 0  ;;  %v536_v10 = vsel %vm485_vm1, %v462_v5, 0  ;;  %v464_v14 = vpack.c.bf16 %v456_v8, %v456_v8  ;;  %v432_v18 = vld [vmem:[%s2376_s17 + $0x18] sm:$0xff]  ;;  %v458_v22 = vld [vmem:[%s2384_s28 + $0x28] sm:$0xff]  ;;  %v439_v23 = vmul.f32 0.125, %v431_v17  ;;  %v433_v29 = vld [vmem:[%s2376_s17 + $0x20] sm:$0xff]  ;;  %s2599_s16 = scalar_lea.hbm %s2710_s5, %s1680_s30 }
  0x6a   : > { %1715 = vmatpush3.bf16.xpose.msra.mxu0 %v490_v9  ;;  %1721 = vmatpush3.bf16.xpose.msra.mxu1 %v536_v10  ;;  %v445_v15 = vpack.c.bf16 %v437_v11, %v437_v11  ;;  %v446_v16 = vpack.c.bf16 %v438_v12, %v438_v12  ;;  %v582_v19 = vsel %vm485_vm1, %v463_v13, 0  ;;  %v440_v24 = vmul.f32 0.125, %v432_v18  ;;  %v434_v30 = vld [vmem:[%s2376_s17 + $0x28] sm:$0xff]  ;;  %v459_v33 = vld [vmem:[%s2384_s28 + $0x30] sm:$0xff]  ;;  %v460_v34 = vld [vmem:[%s2384_s28 + $0x38] sm:$0xff]  ;;  %s1425_s14 = sshll.u32 %s2533_s24, 4  ;;  %s2601_s14 = int_to_ptr.vmem [resolvable:$true] %s1425_s14 }
  0x6b   : > { %1726 = vmatprep.subr.bf16.mxu0 %v2173_v0  ;;  %1732 = vmatprep.subr.bf16.mxu1 %v2173_v0  ;;  %v628_v20 = vsel %vm485_vm1, %v464_v14, 0  ;;  %v465_v25 = vpack.c.bf16 %v457_v21, %v457_v21  ;;  %v466_v26 = vpack.c.bf16 %v458_v22, %v458_v22  ;;  %v447_v27 = vpack.c.bf16 %v439_v23, %v439_v23  ;;  %v435_v41 = vld [vmem:[%s2376_s17 + $0x30] sm:$0xff]  ;;  %v436_v42 = vld [vmem:[%s2376_s17 + $0x38] sm:$0xff]  ;;  %s1390_s11 = scalar_lea.sflag [#allocation12], %s2369_s9  ;;  %s2045_s1 = scalar_lea.vmem %s2601_s14, 1024 }
  0x6c   : > { %v448_v28 = vpack.c.bf16 %v440_v24, %v440_v24  ;;  %v441_v35 = vmul.f32 0.125, %v433_v29  ;;  %v442_v36 = vmul.f32 0.125, %v434_v30  ;;  %v467_v37 = vpack.c.bf16 %v459_v33, %v459_v33  ;;  %v854_v49 = vld [vmem:[%s2395_s7] sm:$0x3]  ;;  %v855_v50 = vld [vmem:[%s2395_s7 + $0x2] sm:$0x3]  ;;  %p2046_p8 = scmp.ne.s32.totalorder %s2601_s14, %s2045_s1 }
  0x6d   : > { %v674_v31 = vsel %vm485_vm1, %v465_v25, 0  ;;  %v720_v32 = vsel %vm485_vm1, %v466_v26, 0  ;;  %v468_v38 = vpack.c.bf16 %v460_v34, %v460_v34  ;;  %v443_v45 = vmul.f32 0.125, %v435_v41  ;;  %v856_v54 = vld [vmem:[%s2395_s7 + $0x4] sm:$0x3]  ;;  %s2176_s18 = smov [#allocation11]  }
  0x6e   : > { %v449_v39 = vpack.c.bf16 %v441_v35, %v441_v35  ;;  %v450_v40 = vpack.c.bf16 %v442_v36, %v442_v36  ;;  %v766_v43 = vsel %vm485_vm1, %v467_v37, 0  ;;  %v444_v46 = vmul.f32 0.125, %v436_v42  ;;  %v857_v55 = vld [vmem:[%s2395_s7 + $0x6] sm:$0x3]  ;;  %v858_v62 = vld [vmem:[%s2395_s7 + $0x8] sm:$0x3]  ;;  %p2047_p0 = pnand %p2046_p8, %p2265_p9 }
  0x6f   : > { %v812_v44 = vsel %vm485_vm1, %v468_v38, 0  ;;  %v451_v47 = vpack.c.bf16 %v443_v45, %v443_v45  ;;  %vm862_vm2 = vnez %v854_v49  ;;  %vm863_vm3 = vnez %v855_v50  ;;  %v859_v2 = vld [vmem:[%s2395_s7 + $0xa] sm:$0x3]  ;;  %v860_v17 = vld [vmem:[%s2395_s7 + $0xc] sm:$0x3]  ;;  %s2049_s8 = sshll.u32 %s2176_s18, 4  ;;  %s2050_s8 = int_to_ptr.vmem [resolvable:$false] %s2049_s8 }
  0x70   : > { %v452_v48 = vpack.c.bf16 %v444_v46, %v444_v46  ;;  %v870_v52 = vsel %vm862_vm2, 16843009, %v2175_v51  ;;  %v871_v53 = vsel %vm863_vm3, 16843009, %v2175_v51  ;;  %vm864_vm4 = vnez %v856_v54  ;;  %p2048_p3 = pneg %p2047_p0  ;;  %s2051_s27 = scalar_lea.vmem %s2050_s8, 2048 }
  0x71   : > { %1717 = vmatmul.mubr.msk.bf16.vlgmr.msra.gmra.mxu0 %vm485_vm1, %v445_v15  ;;  %1723 = vmatmul.mubr.msk.bf16.vlgmr.msra.gmra.mxu1 %vm485_vm1, %v446_v16  ;;  %v878_v56 = vunpack.c.0.s8 %v870_v52  ;;  %v879_v57 = vunpack.c.0.s8 %v871_v53  ;;  %vm865_vm5 = vnez %v857_v55  ;;  %v872_v58 = vsel %vm864_vm4, 16843009, %v2175_v51  ;;  %p2052_p4 = scmp.lt.s32.totalorder %s2601_s14, %s2050_s8  ;;  %p2053_p7 = scmp.lt.s32.totalorder %s2051_s27, %s2045_s1 }
  0x72   : > { %1727 = vmatpush3.bf16.xpose.msra.mxu0 %v582_v19  ;;  %1733 = vmatpush3.bf16.xpose.msra.mxu1 %v628_v20  ;;  %v873_v59 = vsel %vm865_vm5, 16843009, %v2175_v51  ;;  %v880_v6 = vunpack.c.0.s8 %v872_v58  ;;  %vm866_vm9 = vnez %v858_v62  ;;  %vm867_vm10 = vnez %v859_v2  ;;  %v861_v20 = vld [vmem:[%s2395_s7 + $0xe] sm:$0x3] }
  0x73   : > { %1728 = vmatprep.mubr.msk.bf16.mxu0 %vm2174_vm0, %v2173_v0  ;;  %1734 = vmatprep.mubr.msk.bf16.mxu1 %vm2174_vm0, %v2173_v0  ;;  %vm886_vm6 = vcmp.ne.s32.totalorder %v878_v56, 0  ;;  %vm887_vm7 = vcmp.ne.s32.totalorder %v879_v57, 0  ;;  %v881_v7 = vunpack.c.0.s8 %v873_v59  ;;  %v874_v13 = vsel %vm866_vm9, 16843009, %v2175_v51  ;;  %p2054_p10 = por %p2053_p7, %p2052_p4 }
  0x74   : > { %1738 = vmatprep.subr.bf16.mxu0 %v2173_v0  ;;  %1744 = vmatprep.subr.bf16.mxu1 %v2173_v0  ;;  %vm888_vm11 = vcmp.ne.s32.totalorder %v880_v6, 0  ;;  %v875_v14 = vsel %vm867_vm10, 16843009, %v2175_v51  ;;  %v882_v24 = vunpack.c.0.s8 %v874_v13  ;;  %vm868_vm13 = vnez %v860_v17 }
  0x75   : > { %vm889_vm12 = vcmp.ne.s32.totalorder %v881_v7, 0  ;;  %v883_v25 = vunpack.c.0.s8 %v875_v14  ;;  %vm869_vm14 = vnez %v861_v20  ;;  %vm1010_vm5 = vcmask 1043456   ;;  %p2055_p13 = pnand %p2054_p10, %p2048_p3 }
  0x76   : > { %vm890_vm15 = vcmp.ne.s32.totalorder %v882_v24, 0 }
  0x77   : > { %vm891_vm2 = vcmp.ne.s32.totalorder %v883_v25, 0 }
  0x79   : > { %1729 = vmatmul.mubr.msk.bf16.vlgmr.msra.gmra.mxu0 %vm485_vm1, %v447_v27  ;;  %1735 = vmatmul.mubr.msk.bf16.vlgmr.msra.gmra.mxu1 %vm485_vm1, %v448_v28 }
  0x7a   : > { %1739 = vmatpush3.bf16.xpose.msra.mxu0 %v674_v31  ;;  %1745 = vmatpush3.bf16.xpose.msra.mxu1 %v720_v32  ;;  %v876_v31 = vsel %vm868_vm13, 16843009, %v2175_v51  ;;  %v877_v32 = vsel %vm869_vm14, 16843009, %v2175_v51 }
  0x7b   : > { %1740 = vmatprep.mubr.msk.bf16.mxu0 %vm2174_vm0, %v2173_v0  ;;  %1746 = vmatprep.mubr.msk.bf16.mxu1 %vm2174_vm0, %v2173_v0  ;;  %v884_v41 = vunpack.c.0.s8 %v876_v31  ;;  %v885_v42 = vunpack.c.0.s8 %v877_v32 }
  0x7c   : > { %1750 = vmatprep.subr.bf16.mxu0 %v2173_v0  ;;  %1756 = vmatprep.subr.bf16.mxu1 %v2173_v0 }
  0x7d   : > { %vm892_vm3 = vcmp.ne.s32.totalorder %v884_v41, 0  ;;  %vm893_vm4 = vcmp.ne.s32.totalorder %v885_v42, 0 }
  0x81   : > { %1741 = vmatmul.mubr.msk.bf16.vlgmr.msra.gmra.mxu0 %vm485_vm1, %v449_v39  ;;  %1747 = vmatmul.mubr.msk.bf16.vlgmr.msra.gmra.mxu1 %vm485_vm1, %v450_v40 }
  0x82   : > { %1751 = vmatpush3.bf16.xpose.msra.mxu0 %v766_v43  ;;  %1757 = vmatpush3.bf16.xpose.msra.mxu1 %v812_v44 }
  0x83   : > { %1752 = vmatprep.mubr.msk.bf16.mxu0 %vm2174_vm0, %v2173_v0  ;;  %1758 = vmatprep.mubr.msk.bf16.mxu1 %vm2174_vm0, %v2173_v0 }
  0x84   : > { %1762 = vmatprep.subr.bf16.mxu0 %v2173_v0  ;;  %1768 = vmatprep.subr.bf16.mxu1 %v2173_v0 }
  0x89   : > { %1753 = vmatmul.mubr.msk.bf16.vlgmr.msra.gmra.mxu0 %vm485_vm1, %v451_v47  ;;  %1759 = vmatmul.mubr.msk.bf16.vlgmr.msra.gmra.mxu1 %vm485_vm1, %v452_v48 }
  0x8a   : > { %1764 = vmatprep.mubr.msk.bf16.mxu0 %vm2174_vm0, %v2173_v0  ;;  %1770 = vmatprep.mubr.msk.bf16.mxu1 %vm2174_vm0, %v2173_v0 }
 0x131   : > { %v526_v60 = vpop.f32.mrf.mxu0  ;;  %v572_v61 = vpop.f32.mrf.mxu1 }
 0x132   : > { %v2468_v63 = vsel %vm886_vm6, -1e+09, %v526_v60  ;;  %v2470_v1 = vsel %vm887_vm7, -1e+09, %v572_v61 }
 0x133   : > { %v1718_v3 = vpop.f32.mrf.mxu0  ;;  %v1724_v4 = vpop.f32.mrf.mxu1  ;;  %v903_v5 = vsel %vm902_vm8, %v2468_v63, -inf  ;;  %v906_v10 = vsel %vm902_vm8, %v2470_v1, -inf }
 0x134   : > { %904 = vmax.xlane.f32.xlu0 %v903_v5 }
 0x135   : > { %v529_v8 = vpop.f32.mrf.mxu0  ;;  %v575_v9 = vpop.f32.mrf.mxu1 }
 0x137   : > { %v1719_v11 = vpop.f32.mrf.mxu0  ;;  %v1725_v12 = vpop.f32.mrf.mxu1 }
 0x138   : > { %907 = vmax.xlane.f32.xlu0 %v906_v10 }
 0x139   : > { %v618_v15 = vpop.f32.mrf.mxu0  ;;  %v664_v16 = vpop.f32.mrf.mxu1 }
 0x13a   : > { %v2478_v18 = vsel %vm888_vm11, -1e+09, %v618_v15  ;;  %v2480_v19 = vsel %vm889_vm12, -1e+09, %v664_v16 }
 0x13b   : > { %v1730_v21 = vpop.f32.mrf.mxu0  ;;  %v1736_v22 = vpop.f32.mrf.mxu1  ;;  %v909_v23 = vsel %vm902_vm8, %v2478_v18, -inf  ;;  %v912_v28 = vsel %vm902_vm8, %v2480_v19, -inf }
 0x13c   : > { %910 = vmax.xlane.f32.xlu1 %v909_v23 }
 0x13d   : > { %v621_v26 = vpop.f32.mrf.mxu0  ;;  %v667_v27 = vpop.f32.mrf.mxu1 }
 0x13f   : > { %v1731_v29 = vpop.f32.mrf.mxu0  ;;  %v1737_v30 = vpop.f32.mrf.mxu1 }
 0x140   : > { %913 = vmax.xlane.f32.xlu1 %v912_v28 }
 0x141   : > { %v710_v33 = vpop.f32.mrf.mxu0  ;;  %v756_v34 = vpop.f32.mrf.mxu1 }
 0x142   : > { %v898_v35 = vsel %vm890_vm15, -1e+09, %v710_v33  ;;  %v899_v36 = vsel %vm891_vm2, -1e+09, %v756_v34  ;;  %v469_v33 = vld [vmem:[%s2392_s29] sm:$0xff]  ;;  %v470_v34 = vld [vmem:[%s2392_s29 + $0x8] sm:$0xff] }
 0x143   : > { %v1742_v37 = vpop.f32.mrf.mxu0  ;;  %v1748_v38 = vpop.f32.mrf.mxu1  ;;  %v918_v39 = vsel %vm902_vm8, %v899_v36, -inf  ;;  %v915_v40 = vsel %vm902_vm8, %v898_v35, -inf }
 0x144   : > { %919 = vmax.xlane.f32.xlu1 %v918_v39  ;;  %916 = vmax.xlane.f32.xlu0 %v915_v40  ;;  %v477_v37 = vpack.c.bf16 %v469_v33, %v469_v33  ;;  %v478_v38 = vpack.c.bf16 %v470_v34, %v470_v34 }
 0x145   : > { %v713_v43 = vpop.f32.mrf.mxu0  ;;  %v759_v44 = vpop.f32.mrf.mxu1 }
 0x146   : > { %v1012_v40 = vsel %vm1010_vm5, %v477_v37, 0  ;;  %v1058_v41 = vsel %vm1010_vm5, %v478_v38, 0 }
 0x147   : > { %v1743_v45 = vpop.f32.mrf.mxu0  ;;  %v1749_v46 = vpop.f32.mrf.mxu1  ;;  %1763 = vmatpush3.bf16.msra.mxu0 %v1012_v40  ;;  %1769 = vmatpush3.bf16.msra.mxu1 %v1058_v41 }
 0x148   : > { %1774 = vmatprep.subr.bf16.mxu0 %v2173_v0  ;;  %1780 = vmatprep.subr.bf16.mxu1 %v2173_v0  ;;  %v471_v45 = vld [vmem:[%s2392_s29 + $0x10] sm:$0xff] }
 0x149   : > { %v802_v47 = vpop.f32.mrf.mxu0  ;;  %v848_v48 = vpop.f32.mrf.mxu1 }
 0x14a   : > { %v900_v49 = vsel %vm892_vm3, -1e+09, %v802_v47  ;;  %v901_v50 = vsel %vm893_vm4, -1e+09, %v848_v48  ;;  %v479_v47 = vpack.c.bf16 %v471_v45, %v471_v45 }
 0x14b   : > { %v1754_v51 = vpop.f32.mrf.mxu0  ;;  %v1760_v52 = vpop.f32.mrf.mxu1  ;;  %v924_v53 = vsel %vm902_vm8, %v901_v50, -inf  ;;  %v921_v54 = vsel %vm902_vm8, %v900_v49, -inf }
 0x14c   : > { %925 = vmax.xlane.f32.xlu1 %v924_v53  ;;  %922 = vmax.xlane.f32.xlu0 %v921_v54 }
 0x14d   : > { %v805_v55 = vpop.f32.mrf.mxu0  ;;  %v851_v56 = vpop.f32.mrf.mxu1 }
 0x14e   : > { %v1104_v55 = vsel %vm1010_vm5, %v479_v47, 0 }
 0x14f   : > { %v1755_v57 = vpop.f32.mrf.mxu0  ;;  %v1761_v58 = vpop.f32.mrf.mxu1 }
 0x150   : > { %v473_v57 = vld [vmem:[%s2392_s29 + $0x20] sm:$0xff] }
 0x1bd   : > { %v905_v59 = vpop.xlane.xlu0 %904 }
 0x1be   : > { %v927_v60 = vsub.f32 %v2468_v63, %v905_v59 }
 0x1c0   : > { %v935_v61 = vmul.f32 1.442695, %v927_v60 }
 0x1c1   : > { %v908_v62 = vpop.xlane.xlu0 %907 }
 0x1c2   : > { %1901 = vpow2.f32 %v935_v61  ;;  %v928_v2 = vsub.f32 %v2470_v1, %v908_v62  ;;  %v481_v61 = vpack.c.bf16 %v473_v57, %v473_v57 }
 0x1c4   : > { %v937_v3 = vmul.f32 1.442695, %v928_v2  ;;  %v474_v2 = vld [vmem:[%s2392_s29 + $0x28] sm:$0xff] }
 0x1c5   : > { %v911_v4 = vpop.xlane.xlu1 %910 }
 0x1c6   : > { %1903 = vpow2.f32 %v937_v3  ;;  %v929_v5 = vsub.f32 %v2478_v18, %v911_v4 }
 0x1c8   : > { %v939_v6 = vmul.f32 1.442695, %v929_v5 }
 0x1c9   : > { %v914_v7 = vpop.xlane.xlu1 %913 }
 0x1ca   : > { %1905 = vpow2.f32 %v939_v6  ;;  %v930_v8 = vsub.f32 %v2480_v19, %v914_v7  ;;  %v1196_v7 = vsel %vm1010_vm5, %v481_v61, 0 }
 0x1cc   : > { %v941_v9 = vmul.f32 1.442695, %v930_v8  ;;  %v482_v8 = vpack.c.bf16 %v474_v2, %v474_v2 }
 0x1cd   : > { %v920_v10 = vpop.xlane.xlu1 %919  ;;  %v917_v11 = vpop.xlane.xlu0 %916 }
 0x1ce   : > { %1907 = vpow2.f32 %v941_v9  ;;  %v932_v63 = vsub.f32 %v899_v36, %v920_v10  ;;  %v931_v12 = vsub.f32 %v898_v35, %v917_v11  ;;  %v475_v11 = vld [vmem:[%s2392_s29 + $0x30] sm:$0xff] }
 0x1cf   : > { %v1902_v13 = vpop.eup %1901 }
 0x1d0   : > { %v945_v14 = vmul.f32 1.442695, %v932_v63  ;;  %v943_v15 = vmul.f32 1.442695, %v931_v12  ;;  %v951_v1 = vsel %vm902_vm8, %v1902_v13, 0.0  ;;  %v1242_v12 = vsel %vm1010_vm5, %v482_v8, 0 }
 0x1d1   : > { %952 = vadd.xlane.f32.xlu0 %v951_v1 }
 0x1d2   : > { %1909 = vpow2.f32 %v945_v14  ;;  %v483_v14 = vpack.c.bf16 %v475_v11, %v475_v11 }
 0x1d3   : > { %v2496_v16 = vpop.eup %1903  ;;  %1911 = vpow2.f32 %v943_v15  ;;  %v476_v15 = vld [vmem:[%s2392_s29 + $0x38] sm:$0xff] }
 0x1d4   : > { %v954_v17 = vsel %vm902_vm8, %v2496_v16, 0.0 }
 0x1d5   : > { %955 = vadd.xlane.f32.xlu1 %v954_v17  ;;  %v926_v18 = vpop.xlane.xlu1 %925  ;;  %v923_v19 = vpop.xlane.xlu0 %922 }
 0x1d6   : > { %v934_v20 = vsub.f32 %v901_v50, %v926_v18  ;;  %v933_v21 = vsub.f32 %v900_v49, %v923_v19  ;;  %v472_v49 = vld [vmem:[%s2392_s29 + $0x18] sm:$0xff]  ;;  %v484_v18 = vpack.c.bf16 %v476_v15, %v476_v15 }
 0x1d7   : > { %v2500_v22 = vpop.eup %1905  ;;  %v480_v54 = vpack.c.bf16 %v472_v49, %v472_v49 }
 0x1d8   : > { %v949_v23 = vmul.f32 1.442695, %v934_v20  ;;  %v947_v24 = vmul.f32 1.442695, %v933_v21  ;;  %v957_v25 = vsel %vm902_vm8, %v2500_v22, 0.0  ;;  %v1288_v20 = vsel %vm1010_vm5, %v483_v14, 0 }
 0x1d9   : > { %958 = vadd.xlane.f32.xlu0 %v957_v25  ;;  %v1150_v60 = vsel %vm1010_vm5, %v480_v54, 0 }
 0x1da   : > { %1913 = vpow2.f32 %v949_v23 }
 0x1db   : > { %v2504_v26 = vpop.eup %1907  ;;  %1915 = vpow2.f32 %v947_v24 }
 0x1dc   : > { %v960_v27 = vsel %vm902_vm8, %v2504_v26, 0.0 }
 0x1dd   : > { %961 = vadd.xlane.f32.xlu1 %v960_v27 }
 0x1df   : > { %v2508_v28 = vpop.eup %1909 }
 0x1e0   : > { %v2510_v29 = vpop.eup %1911  ;;  %v966_v30 = vsel %vm902_vm8, %v2508_v28, 0.0 }
 0x1e1   : > { %967 = vadd.xlane.f32.xlu1 %v966_v30  ;;  %v963_v31 = vsel %vm902_vm8, %v2510_v29, 0.0 }
 0x1e2   : > { %964 = vadd.xlane.f32.xlu0 %v963_v31 }
 0x1e7   : > { %v2516_v32 = vpop.eup %1913 }
 0x1e8   : > { %v2520_v35 = vpop.eup %1915  ;;  %v972_v36 = vsel %vm902_vm8, %v2516_v32, 0.0 }
 0x1e9   : > { %973 = vadd.xlane.f32.xlu1 %v972_v36  ;;  %v969_v39 = vsel %vm902_vm8, %v2520_v35, 0.0 }
 0x1ea   : > { %970 = vadd.xlane.f32.xlu0 %v969_v39 }
 0x25a   : > { %v953_v42 = vpop.xlane.xlu0 %952 }
 0x25b   : > { %1917 = vrcp.f32 %v953_v42 }
 0x25e   : > { %v956_v43 = vpop.xlane.xlu1 %955 }
 0x25f   : > { %1919 = vrcp.f32 %v956_v43 }
 0x262   : > { %v959_v44 = vpop.xlane.xlu0 %958 }
 0x263   : > { %1921 = vrcp.f32 %v959_v44 }
 0x266   : > { %v962_v46 = vpop.xlane.xlu1 %961 }
 0x267   : > { %1923 = vrcp.f32 %v962_v46 }
 0x268   : > { %v1918_v48 = vpop.eup %1917 }
 0x269   : > { %v976_v50 = vmul.f32 %v1918_v48, %v1902_v13 }
 0x26a   : > { %v968_v51 = vpop.xlane.xlu1 %967 }
 0x26b   : > { %1925 = vrcp.f32 %v968_v51  ;;  %v965_v52 = vpop.xlane.xlu0 %964  ;;  %991 = vst.msk [vmem:[%s2533_s24] sm:$0xff] %vm902_vm8, %v976_v50  ;;  %v999_v53 = vpack.c.bf16 %v976_v50, %v976_v50 }
 0x26c   : > { %v1920_v56 = vpop.eup %1919  ;;  %1927 = vrcp.f32 %v965_v52 }
 0x26d   : > { %1765 = vmatmul.mubr.msk.bf16.vlgmr.msra.gmra.mxu0 %vm902_vm8, %v999_v53  ;;  %v978_v58 = vmul.f32 %v1920_v56, %v2496_v16 }
 0x26e   : > { %1775 = vmatpush3.bf16.msra.mxu0 %v1104_v55  ;;  %1776 = vmatprep.mubr.msk.bf16.mxu0 %vm2174_vm0, %v2173_v0 }
 0x26f   : > { %992 = vst.msk [vmem:[%s2533_s24 + $0x8] sm:$0xff] %vm902_vm8, %v978_v58  ;;  %v1000_v59 = vpack.c.bf16 %v978_v58, %v978_v58  ;;  %1786 = vmatprep.subr.bf16.mxu0 %v2173_v0 }
 0x270   : > { %v1922_v62 = vpop.eup %1921 }
 0x271   : > { %1771 = vmatmul.mubr.msk.bf16.vlgmr.msra.gmra.mxu1 %vm902_vm8, %v1000_v59  ;;  %v980_v3 = vmul.f32 %v1922_v62, %v2500_v22  ;;  %v1334_v22 = vsel %vm1010_vm5, %v484_v18, 0 }
 0x272   : > { %1781 = vmatpush3.bf16.msra.mxu1 %v1150_v60  ;;  %v974_v4 = vpop.xlane.xlu1 %973  ;;  %1782 = vmatprep.mubr.msk.bf16.mxu1 %vm2174_vm0, %v2173_v0 }
 0x273   : > { %1929 = vrcp.f32 %v974_v4  ;;  %v971_v5 = vpop.xlane.xlu0 %970  ;;  %993 = vst.msk [vmem:[%s2533_s24 + $0x10] sm:$0xff] %vm902_vm8, %v980_v3  ;;  %v1001_v6 = vpack.c.bf16 %v980_v3, %v980_v3  ;;  %1792 = vmatprep.subr.bf16.mxu1 %v2173_v0 }
 0x274   : > { %v1924_v9 = vpop.eup %1923  ;;  %1931 = vrcp.f32 %v971_v5 }
 0x275   : > { %1777 = vmatmul.mubr.msk.bf16.vlgmr.msra.gmra.mxu0 %vm902_vm8, %v1001_v6  ;;  %v982_v10 = vmul.f32 %v1924_v9, %v2504_v26 }
 0x276   : > { %1787 = vmatpush3.bf16.msra.mxu0 %v1196_v7  ;;  %1788 = vmatprep.mubr.msk.bf16.mxu0 %vm2174_vm0, %v2173_v0 }
 0x277   : > { %994 = vst.msk [vmem:[%s2533_s24 + $0x18] sm:$0xff] %vm902_vm8, %v982_v10  ;;  %v1002_v63 = vpack.c.bf16 %v982_v10, %v982_v10  ;;  %1798 = vmatprep.subr.bf16.mxu0 %v2173_v0 }
 0x278   : > { %v1926_v13 = vpop.eup %1925 }
 0x279   : > { %v1928_v1 = vpop.eup %1927  ;;  %1783 = vmatmul.mubr.msk.bf16.vlgmr.msra.gmra.mxu1 %vm902_vm8, %v1002_v63  ;;  %v986_v16 = vmul.f32 %v1926_v13, %v2508_v28 }
 0x27a   : > { %1793 = vmatpush3.bf16.msra.mxu1 %v1242_v12  ;;  %v984_v17 = vmul.f32 %v1928_v1, %v2510_v29  ;;  %1794 = vmatprep.mubr.msk.bf16.mxu1 %vm2174_vm0, %v2173_v0 }
 0x27b   : > { %996 = vst.msk [vmem:[%s2533_s24 + $0x28] sm:$0xff] %vm902_vm8, %v986_v16  ;;  %1804 = vmatprep.subr.bf16.mxu1 %v2173_v0  ;;  %v1004_v21 = vpack.c.bf16 %v986_v16, %v986_v16 }
 0x27c   : > { %995 = vst.msk [vmem:[%s2533_s24 + $0x20] sm:$0xff] %vm902_vm8, %v984_v17  ;;  %v1003_v19 = vpack.c.bf16 %v984_v17, %v984_v17 }
 0x27e   : > { %1789 = vmatmul.mubr.msk.bf16.vlgmr.msra.gmra.mxu0 %vm902_vm8, %v1003_v19 }
 0x27f   : > { %1799 = vmatpush3.bf16.msra.mxu0 %v1288_v20  ;;  %1800 = vmatprep.mubr.msk.bf16.mxu0 %vm2174_vm0, %v2173_v0 }
 0x280   : > { %v1930_v23 = vpop.eup %1929 }
 0x281   : > { %v1932_v24 = vpop.eup %1931  ;;  %v990_v25 = vmul.f32 %v1930_v23, %v2516_v32  ;;  %1795 = vmatmul.mubr.msk.bf16.vlgmr.msra.gmra.mxu1 %vm902_vm8, %v1004_v21 }
 0x282   : > { %v988_v26 = vmul.f32 %v1932_v24, %v2520_v35  ;;  %1805 = vmatpush3.bf16.msra.mxu1 %v1334_v22  ;;  %1806 = vmatprep.mubr.msk.bf16.mxu1 %vm2174_vm0, %v2173_v0 }
 0x283   : > { %998 = vst.msk [vmem:[%s2533_s24 + $0x38] sm:$0xff] %vm902_vm8, %v990_v25  ;;  %v1006_v28 = vpack.c.bf16 %v990_v25, %v990_v25 }
 0x284   : > { %997 = vst.msk [vmem:[%s2533_s24 + $0x30] sm:$0xff] %vm902_vm8, %v988_v26  ;;  %v1005_v27 = vpack.c.bf16 %v988_v26, %v988_v26 }
 0x286   : > { %1801 = vmatmul.mubr.msk.bf16.vlgmr.msra.gmra.mxu0 %vm902_vm8, %v1005_v27 }
 0x289   : > { %1807 = vmatmul.mubr.msk.bf16.vlgmr.msra.gmra.mxu1 %vm902_vm8, %v1006_v28 }
 0x28a   : > { %2058 = shalt.err (!%p2055_p13)
}
 0x28b   : > { %s2059_s20 = scalar_lea.hbm %s2599_s16, 1024  ;;  %s2063_s26 = scalar_lea.hbm %s2710_s5, 2048 }
 0x28c   : > { %p2060_p12 = scmp.ne.s32.totalorder %s2599_s16, %s2059_s20  ;;  %p2064_p5 = scmp.lt.s32.totalorder %s2599_s16, %s2710_s5 }
 0x28d   : > { %p2065_p6 = scmp.lt.s32.totalorder %s2063_s26, %s2059_s20 }
 0x28e   : > { %p2061_p1 = pnand %p2060_p12, %p2265_p9 }
 0x28f   : > { %p2066_p8 = por %p2065_p6, %p2064_p5 }
 0x290   : > { %p2062_p2 = pneg %p2061_p1 }
 0x292   : > { %p2067_p0 = pnand %p2066_p8, %p2062_p2 }
 0x294   : > { %2070 = shalt.err (!%p2067_p0)
}
 0x295   : > { %s2177_s29 = smov 128   ;;  %s2178_s25 = smov 8  }
 0x296   : > { %1819 = dma.vmem_to_hbm [thread:$0]  (%p2265_p9), %s2601_s14, 1024, %s2599_s16, %s1390_s11, %s2177_s29, %s2177_s29, %s2178_s25  }
 0x297   : > { %s2630_s7 = scalar_lea.vmem [#allocation10], %s2372_s13  ;;  %s2733_s4 = sld [smem:[#allocation24_spill]] }
 0x298   : > { %s1406_s13 = sshll.u32 %s2630_s7, 4  ;;  %s1385_s16 = scalar_lea.sflag [#allocation4], %s2369_s9  ;;  %s2645_s13 = int_to_ptr.vmem [resolvable:$true] %s1406_s13 }
 0x299   : > { %s2071_s11 = scalar_lea.vmem %s2645_s13, 1024  ;;  %s2179_s1 = smov [#allocation10]  }
 0x29a   : > { %p2072_p3 = scmp.ne.s32.totalorder %s2645_s13, %s2071_s11  ;;  %s2075_s18 = sshll.u32 %s2179_s1, 4  ;;  %s2076_s18 = int_to_ptr.vmem [resolvable:$false] %s2075_s18 }
 0x29b   : > { %s2077_s21 = scalar_lea.vmem %s2076_s18, 2048  ;;  %p2078_p10 = scmp.lt.s32.totalorder %s2645_s13, %s2076_s18 }
 0x29c   : > { %p2073_p4 = pnand %p2072_p3, %p2265_p9  ;;  %p2079_p13 = scmp.lt.s32.totalorder %s2077_s21, %s2071_s11 }
 0x29d   : > { %s2654_s15 = scalar_lea.hbm %s2733_s4, %s1680_s30 }
 0x29e   : > { %p2074_p7 = pneg %p2073_p4  ;;  %p2080_p12 = por %p2079_p13, %p2078_p10 }
 0x2a0   : > { %p2081_p1 = pnand %p2080_p12, %p2074_p7 }
 0x32d   : > { %v1048_v0 = vpop.f32.mrf.mxu0 }
 0x32e   : > { %1376 = vst.msk [vmem:[%s2630_s7] sm:$0xff] %vm485_vm1, %v1048_v0 }
 0x32f   : > { %v1766_v29 = vpop.f32.mrf.mxu0 }
 0x331   : > { %v1051_v30 = vpop.f32.mrf.mxu0  ;;  %v1094_v31 = vpop.f32.mrf.mxu1 }
 0x332   : > { %1377 = vst.msk [vmem:[%s2630_s7 + $0x8] sm:$0xff] %vm485_vm1, %v1094_v31 }
 0x333   : > { %v1767_v32 = vpop.f32.mrf.mxu0  ;;  %v1772_v33 = vpop.f32.mrf.mxu1 }
 0x335   : > { %v1097_v34 = vpop.f32.mrf.mxu1  ;;  %v1140_v35 = vpop.f32.mrf.mxu0 }
 0x336   : > { %1378 = vst.msk [vmem:[%s2630_s7 + $0x10] sm:$0xff] %vm485_vm1, %v1140_v35 }
 0x337   : > { %v1773_v36 = vpop.f32.mrf.mxu1  ;;  %v1778_v37 = vpop.f32.mrf.mxu0 }
 0x339   : > { %v1143_v38 = vpop.f32.mrf.mxu0  ;;  %v1186_v39 = vpop.f32.mrf.mxu1 }
 0x33a   : > { %1379 = vst.msk [vmem:[%s2630_s7 + $0x18] sm:$0xff] %vm485_vm1, %v1186_v39 }
 0x33b   : > { %v1779_v40 = vpop.f32.mrf.mxu0  ;;  %v1784_v41 = vpop.f32.mrf.mxu1 }
 0x33d   : > { %v1189_v42 = vpop.f32.mrf.mxu1 }
 0x33e   : > { %v1232_v43 = vpop.f32.mrf.mxu0 }
 0x33f   : > { %1380 = vst.msk [vmem:[%s2630_s7 + $0x20] sm:$0xff] %vm485_vm1, %v1232_v43  ;;  %v1785_v44 = vpop.f32.mrf.mxu1 }
 0x340   : > { %v1790_v45 = vpop.f32.mrf.mxu0 }
 0x341   : > { %v1278_v46 = vpop.f32.mrf.mxu1 }
 0x342   : > { %v1235_v47 = vpop.f32.mrf.mxu0  ;;  %1381 = vst.msk [vmem:[%s2630_s7 + $0x28] sm:$0xff] %vm485_vm1, %v1278_v46 }
 0x343   : > { %v1796_v48 = vpop.f32.mrf.mxu1 }
 0x344   : > { %v1791_v49 = vpop.f32.mrf.mxu0 }
 0x345   : > { %v1281_v50 = vpop.f32.mrf.mxu1 }
 0x346   : > { %v1324_v51 = vpop.f32.mrf.mxu0 }
 0x347   : > { %1382 = vst.msk [vmem:[%s2630_s7 + $0x30] sm:$0xff] %vm485_vm1, %v1324_v51  ;;  %v1797_v52 = vpop.f32.mrf.mxu1 }
 0x348   : > { %v1802_v53 = vpop.f32.mrf.mxu0 }
 0x349   : > { %v1370_v54 = vpop.f32.mrf.mxu1 }
 0x34a   : > { %v1327_v55 = vpop.f32.mrf.mxu0  ;;  %1383 = vst.msk [vmem:[%s2630_s7 + $0x38] sm:$0xff] %vm485_vm1, %v1370_v54 }
 0x34b   : > { %v1808_v56 = vpop.f32.mrf.mxu1 }
 0x34c   : > { %2084 = shalt.err (!%p2081_p1)
}
 0x34d   : > { %s2085_s30 = scalar_lea.hbm %s2654_s15, 1024  ;;  %s2089_s27 = scalar_lea.hbm %s2733_s4, 2048 }
 0x34e   : > { %p2086_p2 = scmp.ne.s32.totalorder %s2654_s15, %s2085_s30  ;;  %p2090_p8 = scmp.lt.s32.totalorder %s2654_s15, %s2733_s4 }
 0x34f   : > { %p2091_p0 = scmp.lt.s32.totalorder %s2089_s27, %s2085_s30 }
 0x350   : > { %p2087_p5 = pnand %p2086_p2, %p2265_p9 }
 0x351   : > { %p2092_p3 = por %p2091_p0, %p2090_p8 }
 0x352   : > { %p2088_p6 = pneg %p2087_p5 }
 0x354   : > { %p2093_p4 = pnand %p2092_p3, %p2088_p6 }
 0x356   : > { %2096 = shalt.err (!%p2093_p4)
}
 0x357   : > { %1818 = dma.vmem_to_hbm [thread:$0]  (%p2265_p9), %s2645_s13, 1024, %s2654_s15, %s1385_s16, %s2177_s29, %s2177_s29, %s2178_s25   ;;  %v1803_v57 = vpop.f32.mrf.mxu0  ;;  %v1373_v58 = vpop.f32.mrf.mxu1 }
 0x359   : > { %v1809_v59 = vpop.f32.mrf.mxu1 }
 0x35a PF: > { %s2734_s12 = sld [smem:[#allocation18_spill]]  ;;  %p2736_p7 = scmp.ge.s32.totalorder %s2163_s23, 2 }
 0x35c   : > { %p1836_p10 = pnand %p2736_p7, %p2272_p11 }
 0x35e   : > { %p1837_p13 = pneg %p1836_p10 }
 0x360   : > { %s1440_s28 = sand.u32 1, %s2734_s12  }
 0x361   : > { %s1441_s10 = scalar_lea.sflag [#allocation4], %s1440_s28 }
 0x362   : > { %2134 = dma.done.wait (%p1837_p13), %s1441_s10, 1024  }
 0x363   : > { %2136 = vsyncadd (%p1837_p13), %s1441_s10, 4294966272  ;;  %s1450_s6 = scalar_lea.sflag [#allocation12], %s1440_s28 }
 0x364   : > { %2138 = dma.done.wait (%p1837_p13), %s1450_s6, 1024  }
 0x365   : > { %2140 = vsyncadd (%p1837_p13), %s1450_s6, 4294966272  ;;  %s31_s23 = sadd.s32 1, %s2163_s23   ;;  %s2737_s29 = sld [smem:[#allocation19_spill]] }
 0x366   : > { %p28_p9 = scmp.ge.s32.totalorder %s31_s23, 4   ;;  %s2738_s20 = sld [smem:[#allocation21_spill]] }
 0x367   : > { %s2739_s25 = sld [smem:[#allocation20_spill]]  ;;  %s2740_s18 = smov %s2147_s19 }
 0x368   : > { %s2742_s21 = smov %s2159_s22 }
 0x369   :  { %30 = sbr.rel (!%p28_p9) target bundleno = 15 (0xf), region = 135 }
 0x36b   : > { %s2741_s19 = smov %s2737_s29 }
 0x36d   : > { %s2743_s22 = smov %s2739_s25 }
 0x36e   :  { %1455 = vsyncpa [#allocation3], 1 }
 0x36f   :  { %1457 = vsyncpa [#allocation3 + $0x1], 1 }
 0x370   :  { %1458 = vsyncpa [#allocation6], 1 }
 0x371   :  { %1460 = vsyncpa [#allocation6 + $0x1], 1 }
 0x372   :  { %1461 = vsyncpa [#allocation9], 1 }
 0x373   :  { %1463 = vsyncpa [#allocation9 + $0x1], 1 }
 0x374   :  { %1464 = vsyncpa [#allocation4], 1 }
 0x375   :  { %1466 = vsyncpa [#allocation4 + $0x1], 1 }
 0x376   :  { %1467 = vsyncpa [#allocation12], 1 }
 0x377   :  { %1469 = vsyncpa [#allocation12 + $0x1], 1 }

</bundles_post_ra>
